<compile_context>
chip_gen: v6e
topology: v6e:2x2x1
jax: 0.10.0
libtpu: 0.0.40
codegen_flags: <defaults>
</compile_context>

<pallas_src>
import functools

import numpy as np
import jax
import jax.numpy as jnp
from jax.experimental import pallas as pl
from jax.experimental.pallas import tpu as pltpu

EPS = 1e-5
LANE = 128          # lane width == cout tile
ROW_TILE_M = 128    # target flattened-M rows per conv tile (f32 acc <= 64 KiB)


def _round_up(x, m):
    return (x + m - 1) // m * m


def _pick_row_tile(ho, wo, target_m=ROW_TILE_M):
    """Largest divisor of ho whose tile (rows * wo) stays <= target_m."""
    best = 1
    for d in range(1, ho + 1):
        if ho % d == 0 and d * wo <= max(target_m, wo):
            best = d
    return best


# ---------------------------------------------------------------------------
# Conv kernel: 3 row-tap matmuls (K = 3*Cin) + per-tile BN partial stats.
# Optionally fuses the 1x1 stride-s downsample conv (centre-tap lanes).
# ---------------------------------------------------------------------------
def _conv_stats_kernel(*refs, kk, s, wo, row_tile, cin, has_ds):
    if has_ds:
        x_ref, w_ref, wd_ref, y_ref, st_ref, yd_ref, std_ref = refs
    else:
        x_ref, w_ref, y_ref, st_ref = refs
        wd_ref = yd_ref = std_ref = None

    kcat = x_ref.shape[-1]          # kk * cin  (kw-concat lane layout)
    ct = w_ref.shape[-1]            # cout tile (lane-dense, 128)
    mt = row_tile * wo

    t = pl.program_id(2)
    r0 = pl.multiple_of(t * row_tile, row_tile)

    acc = jnp.zeros((mt, ct), jnp.float32)
    centre = None
    for kh in range(kk):                      # 3 taps, K = 3*cin each
        ph, dq = kh % s, kh // s              # H-phase / in-phase row offset
        win = x_ref[ph, pl.ds(r0 + dq, row_tile), :, :]      # (rt, wo, kcat) bf16
        win2d = win.reshape(mt, kcat)
        acc = acc + jnp.dot(win2d, w_ref[kh],
                            preferred_element_type=jnp.float32)
        if has_ds and kh == kk // 2:
            centre = win2d[:, cin:2 * cin]    # == input of the 1x1 stride-s conv

    # Each y tile is written exactly once (no per-tap VMEM RMW).
    y_ref[...] = acc.reshape(1, row_tile, wo, ct).astype(y_ref.dtype)
    # Per-tile BN partials from the f32 accumulator (free in the same pass).
    # NOTE: E[x^2]-E[x]^2 in f32 can cancel for |mean| >> std; fine for
    # conv outputs with random weights / zero bias.
    st_ref[0, 0] = jnp.concatenate(
        [jnp.sum(acc, axis=0, keepdims=True),
         jnp.sum(acc * acc, axis=0, keepdims=True)], axis=0)

    if has_ds:
        yd = jnp.dot(centre, wd_ref[...], preferred_element_type=jnp.float32)
        yd_ref[...] = yd.reshape(1, row_tile, wo, ct).astype(yd_ref.dtype)
        std_ref[0, 0] = jnp.concatenate(
            [jnp.sum(yd, axis=0, keepdims=True),
             jnp.sum(yd * yd, axis=0, keepdims=True)], axis=0)


def conv_phase1(xph, w_taps, *, ho, wo, kk, s, row_tile, wd=None):
    """xph: (N*s, Hq, Wo, kk*Cin) bf16 kw-concat + H-phase decomposed input.
       w_taps: (kk, kk*Cin, Cp) bf16.  Optional wd: (Cin, Cp) bf16 (1x1 conv).
       Returns y (N, Ho, Wo, Cp) bf16 and per-(image, row-tile) [sum, sum_sq]
       stats (N, nt, 2, Cp) f32 (plus the same pair for the downsample)."""
    n = xph.shape[0] // s
    hq, kcat = xph.shape[1], xph.shape[3]
    assert xph.shape[2] == wo
    cin = kcat // kk
    cp = w_taps.shape[-1]
    ct = min(cp, LANE)
    nj = cp // ct
    nt = ho // row_tile
    has_ds = wd is not None

    in_specs = [
        # Full per-image phase block; index constant across (j, t) -> fetched
        # once per image (Pallas skips re-DMA on unchanged block index).
        pl.BlockSpec((s, hq, wo, kcat), lambda i, j, t: (i, 0, 0, 0)),
        pl.BlockSpec((kk, kcat, ct), lambda i, j, t: (0, 0, j)),
    ]
    args = [xph, w_taps]
    out_shape = [jax.ShapeDtypeStruct((n, ho, wo, cp), jnp.bfloat16),
                 jax.ShapeDtypeStruct((n, nt, 2, cp), jnp.float32)]
    out_specs = [pl.BlockSpec((1, row_tile, wo, ct), lambda i, j, t: (i, t, 0, j)),
                 pl.BlockSpec((1, 1, 2, ct), lambda i, j, t: (i, t, 0, j))]
    if has_ds:
        in_specs.append(pl.BlockSpec((cin, ct), lambda i, j, t: (0, j)))
        args.append(wd)
        out_shape += [jax.ShapeDtypeStruct((n, ho, wo, cp), jnp.bfloat16),
                      jax.ShapeDtypeStruct((n, nt, 2, cp), jnp.float32)]
        out_specs += [pl.BlockSpec((1, row_tile, wo, ct), lambda i, j, t: (i, t, 0, j)),
                      pl.BlockSpec((1, 1, 2, ct), lambda i, j, t: (i, t, 0, j))]

    flops = 2 * n * ho * wo * kcat * cp
    if has_ds:
        flops += 2 * n * ho * wo * cin * cp
    bytes_accessed = int(xph.size * 2 + w_taps.size * 2
                         + (2 if has_ds else 1) * (n * ho * wo * cp * 2
                                                   + n * nt * 2 * cp * 4)
                         + (wd.size * 2 if has_ds else 0))

    return pl.pallas_call(
        functools.partial(_conv_stats_kernel, kk=kk, s=s, wo=wo,
                          row_tile=row_tile, cin=cin, has_ds=has_ds),
        grid=(n, nj, nt),
        in_specs=in_specs,
        out_specs=tuple(out_specs),
        out_shape=tuple(out_shape),
        compiler_params=pltpu.CompilerParams(
            dimension_semantics=("parallel", "parallel", "parallel")),
        cost_estimate=pl.CostEstimate(flops=flops, transcendentals=0,
                                      bytes_accessed=bytes_accessed),
    )(*args)


# ---------------------------------------------------------------------------
# BN-apply kernels (folded scale/shift, f32 math, bf16/f32 outputs)
# ---------------------------------------------------------------------------
def _scale_shift_kernel(y_ref, sc_ref, sh_ref, o_ref, *, relu):
    out = y_ref[...].astype(jnp.float32) * sc_ref[...] + sh_ref[...]
    if relu:
        out = jnp.maximum(out, 0.0)
    o_ref[...] = out.astype(o_ref.dtype)


def bn_apply(y, scale, shift, *, relu, row_tile, out_dtype=jnp.bfloat16):
    n, ho, wo, cp = y.shape
    ct = min(cp, LANE)
    nj, nt = cp // ct, ho // row_tile
    blk = pl.BlockSpec((1, row_tile, wo, ct), lambda i, j, t: (i, t, 0, j))
    cblk = pl.BlockSpec((1, 1, 1, ct), lambda i, j, t: (0, 0, 0, j))
    return pl.pallas_call(
        functools.partial(_scale_shift_kernel, relu=relu),
        grid=(n, nj, nt),
        in_specs=[blk, cblk, cblk],
        out_specs=blk,
        out_shape=jax.ShapeDtypeStruct((n, ho, wo, cp), out_dtype),
        compiler_params=pltpu.CompilerParams(
            dimension_semantics=("parallel", "parallel", "parallel")),
    )(y, scale, shift)


def _bn_add_bn_relu_kernel(y_ref, r_ref, sc_ref, sh_ref, scr_ref, shr_ref, o_ref):
    out = y_ref[...].astype(jnp.float32) * sc_ref[...] + sh_ref[...]
    res = r_ref[...].astype(jnp.float32) * scr_ref[...] + shr_ref[...]
    o_ref[...] = jnp.maximum(out + res, 0.0).astype(o_ref.dtype)


def bn_add_bn_relu(y, res, sc, sh, scr, shr, *, row_tile):
    n, ho, wo, cp = y.shape
    ct = min(cp, LANE)
    nj, nt = cp // ct, ho // row_tile
    blk = pl.BlockSpec((1, row_tile, wo, ct), lambda i, j, t: (i, t, 0, j))
    cblk = pl.BlockSpec((1, 1, 1, ct), lambda i, j, t: (0, 0, 0, j))
    return pl.pallas_call(
        _bn_add_bn_relu_kernel,
        grid=(n, nj, nt),
        in_specs=[blk, blk, cblk, cblk, cblk, cblk],
        out_specs=blk,
        out_shape=jax.ShapeDtypeStruct((n, ho, wo, cp), jnp.float32),
        compiler_params=pltpu.CompilerParams(
            dimension_semantics=("parallel", "parallel", "parallel")),
    )(y, res, sc, sh, scr, shr)


def _bn_add_identity_relu_kernel(y_ref, r_ref, sc_ref, sh_ref, o_ref):
    out = y_ref[...].astype(jnp.float32) * sc_ref[...] + sh_ref[...]
    res = r_ref[...]                                  # (1, rt, wo, cin) f32
    pad_c = out.shape[-1] - res.shape[-1]
    if pad_c:                                         # lane-pad in-kernel (7b)
        res = jnp.pad(res, ((0, 0), (0, 0), (0, 0), (0, pad_c)))
    o_ref[...] = jnp.maximum(out + res, 0.0).astype(o_ref.dtype)


def bn_add_identity_relu(y, x_res, sc, sh, *, row_tile):
    n, ho, wo, cp = y.shape
    cin = x_res.shape[-1]
    nt = ho // row_tile
    yblk = pl.BlockSpec((1, row_tile, wo, cp), lambda i, t: (i, t, 0, 0))
    rblk = pl.BlockSpec((1, row_tile, wo, cin), lambda i, t: (i, t, 0, 0))
    cblk = pl.BlockSpec((1, 1, 1, cp), lambda i, t: (0, 0, 0, 0))
    return pl.pallas_call(
        _bn_add_identity_relu_kernel,
        grid=(n, nt),
        in_specs=[yblk, rblk, cblk, cblk],
        out_specs=yblk,
        out_shape=jax.ShapeDtypeStruct((n, ho, wo, cp), jnp.float32),
        compiler_params=pltpu.CompilerParams(
            dimension_semantics=("parallel", "parallel")),
    )(y, x_res, sc, sh)


# ---------------------------------------------------------------------------
# Plain-JAX glue: kw-concat + H-phase layout, weight packing, BN stat folding
# ---------------------------------------------------------------------------
def _build_conv_input(x_bf16, s, wo, kk=3, pad=1):
    """NHWC bf16 -> (N*s, Hq, Wo, kk*C): spatial pad + kw lane-concat +
    H-phase decomposition.  One fused XLA pass (the pad fuses with the concat),
    ~3/s x the activation bytes instead of the 9x of full im2col."""
    n, h, w, c = x_bf16.shape
    xp = jnp.pad(x_bf16, ((0, 0), (pad, pad), (pad, pad), (0, 0)))
    cols = [xp[:, :, kw: kw + (wo - 1) * s + 1: s, :] for kw in range(kk)]
    b = jnp.concatenate(cols, axis=-1)                # (n, h+2p, wo, kk*c)
    hp = h + 2 * pad
    assert hp % s == 0
    b = b.reshape(n, hp // s, s, wo, kk * c)
    b = jnp.transpose(b, (0, 2, 1, 3, 4))
    return b.reshape(n * s, hp // s, wo, kk * c)


def _pack_conv_w(w_oihw, cin_to, cout_to):
    """[Cout, Cin, kh, kw] -> [kh, kw*cin_to + ci, cout_to] bf16 (zero pad)."""
    cout, cin, kh, kw = w_oihw.shape
    w = jnp.pad(w_oihw, ((0, cout_to - cout), (0, cin_to - cin), (0, 0), (0, 0)))
    w = jnp.transpose(w, (2, 3, 1, 0)).reshape(kh, kw * cin_to, cout_to)
    return w.astype(jnp.bfloat16)


def _bn_fold(stats, m_total, gamma_pad, beta_pad):
    """Per-(image, tile) [sum, sum_sq] (N, nt, 2, Cp) -> scale/shift (1,1,1,Cp)."""
    tot = jnp.sum(stats, axis=(0, 1))                 # (2, Cp)
    mean = tot[0] / m_total
    var = jnp.maximum(tot[1] / m_total - mean * mean, 0.0)   # biased variance
    inv = jax.lax.rsqrt(var + EPS)
    scale = gamma_pad * inv
    shift = beta_pad - mean * scale
    return (scale.reshape(1, 1, 1, -1).astype(jnp.float32),
            shift.reshape(1, 1, 1, -1).astype(jnp.float32))


def init_params(key, cin, cout, stride):
    ks = jax.random.split(key, 9)
    p = {
        "w1": 0.1 * jax.random.normal(ks[0], (cout, cin, 3, 3), jnp.float32),
        "g1": 1.0 + 0.1 * jax.random.normal(ks[1], (cout,), jnp.float32),
        "b1": 0.1 * jax.random.normal(ks[2], (cout,), jnp.float32),
        "w2": 0.1 * jax.random.normal(ks[3], (cout, cout, 3, 3), jnp.float32),
        "g2": 1.0 + 0.1 * jax.random.normal(ks[4], (cout,), jnp.float32),
        "b2": 0.1 * jax.random.normal(ks[5], (cout,), jnp.float32),
    }
    if stride > 1:
        p["wd"] = 0.1 * jax.random.normal(ks[6], (cout, cin, 1, 1), jnp.float32)
        p["gd"] = 1.0 + 0.1 * jax.random.normal(ks[7], (cout,), jnp.float32)
        p["bd"] = 0.1 * jax.random.normal(ks[8], (cout,), jnp.float32)
    return p


# ---------------------------------------------------------------------------
# BasicBlock forward (NCHW in / NCHW out, training-mode BatchNorm)
# ---------------------------------------------------------------------------
def basic_block_forward(x_nchw, p, stride):
    x = jnp.transpose(x_nchw, (0, 2, 3, 1)).astype(jnp.float32)   # NCHW -> NHWC
    n, h, w, cin = x.shape
    cout = p["w1"].shape[0]
    cp = _round_up(cout, LANE)
    assert h % stride == 0 and w % stride == 0
    ho, wo = h // stride, w // stride
    m_total = n * ho * wo
    row_tile = _pick_row_tile(ho, wo)

    # ---- conv1 (3x3, stride, pad=1) [+ fused 1x1 stride-s downsample] ------
    xk1 = _build_conv_input(x.astype(jnp.bfloat16), stride, wo)
    w1 = _pack_conv_w(p["w1"], cin, cp)
    if stride > 1:
        wd = jnp.pad(jnp.transpose(p["wd"][:, :, 0, 0], (1, 0)),
                     ((0, 0), (0, cp - cout))).astype(jnp.bfloat16)
        y1, st1, yd, std = conv_phase1(xk1, w1, ho=ho, wo=wo, kk=3, s=stride,
                                       row_tile=row_tile, wd=wd)
    else:
        assert cin == cout, "identity residual requires in_channels == out_channels"
        y1, st1 = conv_phase1(xk1, w1, ho=ho, wo=wo, kk=3, s=stride,
                              row_tile=row_tile)

    g1 = jnp.pad(p["g1"], (0, cp - cout))
    b1 = jnp.pad(p["b1"], (0, cp - cout))
    sc1, sh1 = _bn_fold(st1, m_total, g1, b1)
    # out1 is a matmul operand of conv2 -> bf16 HBM intermediate (review #5)
    out1 = bn_apply(y1, sc1, sh1, relu=True, row_tile=row_tile)

    # ---- conv2 (3x3, stride 1, pad 1) ---------------------------------------
    xk2 = _build_conv_input(out1, 1, wo)              # pad fuses with concat
    w2 = _pack_conv_w(p["w2"], cp, cp)
    y2, st2 = conv_phase1(xk2, w2, ho=ho, wo=wo, kk=3, s=1, row_tile=row_tile)
    g2 = jnp.pad(p["g2"], (0, cp - cout))
    b2 = jnp.pad(p["b2"], (0, cp - cout))
    sc2, sh2 = _bn_fold(st2, m_total, g2, b2)

    # ---- residual + bn2 (+ downsample bn) + add + ReLU ----------------------
    if stride > 1:
        gd = jnp.pad(p["gd"], (0, cp - cout))
        bd = jnp.pad(p["bd"], (0, cp - cout))
        scd, shd = _bn_fold(std, m_total, gd, bd)
        out = bn_add_bn_relu(y2, yd, sc2, sh2, scd, shd, row_tile=row_tile)
    else:
        out = bn_add_identity_relu(y2, x, sc2, sh2, row_tile=row_tile)

    out = out[:, :, :, :cout]
    # NOTE: a consumer that accepts NHWC could skip this boundary transpose.
    return jnp.transpose(out, (0, 3, 1, 2))           # NHWC -> NCHW


# ---------------------------------------------------------------------------
# Pure-JAX reference (mirrors PyTorch training-mode BasicBlock; bf16 conv
# operands to match the kernel's MXU precision, f32 accumulation / BN math)
# ---------------------------------------------------------------------------
def reference_forward(x_nchw, p, stride):
    x = jnp.transpose(x_nchw, (0, 2, 3, 1)).astype(jnp.float32)

    def conv(y, wgt, s, pad):
        w_hwio = jnp.transpose(wgt, (2, 3, 1, 0))
        return jax.lax.conv_general_dilated(
            y.astype(jnp.bfloat16), w_hwio.astype(jnp.bfloat16), (s, s),
            [(pad, pad), (pad, pad)],
            dimension_numbers=("NHWC", "HWIO", "NHWC"),
            preferred_element_type=jnp.float32)

    def bn(y, g, b):
        m = y.mean(axis=(0, 1, 2))
        v = ((y - m) ** 2).mean(axis=(0, 1, 2))
        return (y - m) * jax.lax.rsqrt(v + EPS) * g + b

    out = jax.nn.relu(bn(conv(x, p["w1"], stride, 1), p["g1"], p["b1"]))
    out = bn(conv(out, p["w2"], 1, 1), p["g2"], p["b2"])
    if stride > 1:
        res = bn(conv(x, p["wd"], stride, 0), p["gd"], p["bd"])
    else:
        res = x
    return jnp.transpose(jax.nn.relu(out + res), (0, 3, 1, 2))


if __name__ == "__main__":
    key = jax.random.PRNGKey(0)
    kx, kp, kx2, kp2 = jax.random.split(key, 4)

    # Case 1: stride=2 with downsample branch.
    batch, cin, cout, hw, stride = 2, 4, 8, 16, 2
    x = jax.random.normal(kx, (batch, cin, hw, hw), jnp.float32)   # NCHW
    params = init_params(kp, cin, cout, stride)
    out = jax.block_until_ready(basic_block_forward(x, params, stride))
    ref = jax.block_until_ready(reference_forward(x, params, stride))
    assert out.shape == (batch, cout, hw // stride, hw // stride)
    np.testing.assert_allclose(np.asarray(out), np.asarray(ref),
                               rtol=2e-2, atol=2e-2)

    # Case 2: stride=1 identity residual (in_channels == out_channels).
    x2 = jax.random.normal(kx2, (batch, cout, hw, hw), jnp.float32)
    params2 = init_params(kp2, cout, cout, 1)
    out2 = jax.block_until_ready(basic_block_forward(x2, params2, 1))
    ref2 = jax.block_until_ready(reference_forward(x2, params2, 1))
    assert out2.shape == (batch, cout, hw, hw)
    np.testing.assert_allclose(np.asarray(out2), np.asarray(ref2),
                               rtol=2e-2, atol=2e-2)

    print("KERNEL_OK")
</pallas_src>

<mosaic_0001>
module attributes {stable_mosaic.version = 11 : i64} {
  func.func @_conv_stats_kernel(%arg0: i32, %arg1: i32, %arg2: i32, %arg3: memref<2x9x8x12xbf16, #tpu.memory_space<vmem>>, %arg4: memref<3x12x128xbf16, #tpu.memory_space<vmem>>, %arg5: memref<4x128xbf16, #tpu.memory_space<vmem>>, %arg6: memref<1x8x8x128xbf16, #tpu.memory_space<vmem>>, %arg7: memref<1x1x2x128xf32, #tpu.memory_space<vmem>>, %arg8: memref<1x8x8x128xbf16, #tpu.memory_space<vmem>>, %arg9: memref<1x1x2x128xf32, #tpu.memory_space<vmem>>) attributes {dimension_semantics = [#tpu.dimension_semantics<parallel>, #tpu.dimension_semantics<parallel>, #tpu.dimension_semantics<parallel>], iteration_bounds = array<i64: 2, 1, 1>, scalar_prefetch = 0 : i64, scratch_operands = 0 : i64, tpu.core_type = #tpu.core_type<tc>, window_params = [{transform_indices = @transform_0, window_bounds = array<i64: 2, 9, 8, 12>}, {transform_indices = @transform_1, window_bounds = array<i64: 3, 12, 128>}, {transform_indices = @transform_2, window_bounds = array<i64: 4, 128>}, {transform_indices = @transform_3, window_bounds = array<i64: 1, 8, 8, 128>}, {transform_indices = @transform_4, window_bounds = array<i64: 1, 1, 2, 128>}, {transform_indices = @transform_5, window_bounds = array<i64: 1, 8, 8, 128>}, {transform_indices = @transform_6, window_bounds = array<i64: 1, 1, 2, 128>}]} {
    %c8_i32 = arith.constant 8 : i32
    %0 = arith.muli %arg2, %c8_i32 : i32
    %1 = tpu.assume_multiple %0, 8 : i32
    %cst = arith.constant 0.000000e+00 : f32
    %2 = vector.broadcast %cst : f32 to vector<64x128xf32>
    %c0_i32 = arith.constant 0 : i32
    %3 = arith.addi %1, %c0_i32 : i32
    %c0 = arith.constant 0 : index
    %4 = arith.index_cast %3 : i32 to index
    %c0_0 = arith.constant 0 : index
    %c0_1 = arith.constant 0 : index
    %5 = vector.load %arg3[%c0, %4, %c0_0, %c0_1] : memref<2x9x8x12xbf16, #tpu.memory_space<vmem>>, vector<1x8x8x12xbf16>
    %6 = vector.shape_cast %5 : vector<1x8x8x12xbf16> to vector<8x8x12xbf16>
    %7 = vector.shape_cast %6 : vector<8x8x12xbf16> to vector<64x12xbf16>
    %c0_2 = arith.constant 0 : index
    %c0_3 = arith.constant 0 : index
    %c0_4 = arith.constant 0 : index
    %8 = vector.load %arg4[%c0_2, %c0_3, %c0_4] : memref<3x12x128xbf16, #tpu.memory_space<vmem>>, vector<1x12x128xbf16>
    %9 = vector.shape_cast %8 : vector<1x12x128xbf16> to vector<12x128xbf16>
    %cst_5 = arith.constant dense<0.000000e+00> : vector<64x128xf32>
    %10 = tpu.matmul %7, %9, %cst_5 {dimension_numbers = #tpu.dot_dimension_numbers<[1], [0], [0], [1], [0, 0, 1, 1], [], []>} : vector<64x12xbf16>, vector<12x128xbf16>, vector<64x128xf32> -> vector<64x128xf32>
    %11 = arith.addf %2, %10 : vector<64x128xf32>
    %c0_i32_6 = arith.constant 0 : i32
    %12 = arith.addi %1, %c0_i32_6 : i32
    %c1 = arith.constant 1 : index
    %13 = arith.index_cast %12 : i32 to index
    %c0_7 = arith.constant 0 : index
    %c0_8 = arith.constant 0 : index
    %14 = vector.load %arg3[%c1, %13, %c0_7, %c0_8] : memref<2x9x8x12xbf16, #tpu.memory_space<vmem>>, vector<1x8x8x12xbf16>
    %15 = vector.shape_cast %14 : vector<1x8x8x12xbf16> to vector<8x8x12xbf16>
    %16 = vector.shape_cast %15 : vector<8x8x12xbf16> to vector<64x12xbf16>
    %c1_9 = arith.constant 1 : index
    %c0_10 = arith.constant 0 : index
    %c0_11 = arith.constant 0 : index
    %17 = vector.load %arg4[%c1_9, %c0_10, %c0_11] : memref<3x12x128xbf16, #tpu.memory_space<vmem>>, vector<1x12x128xbf16>
    %18 = vector.shape_cast %17 : vector<1x12x128xbf16> to vector<12x128xbf16>
    %cst_12 = arith.constant dense<0.000000e+00> : vector<64x128xf32>
    %19 = tpu.matmul %16, %18, %cst_12 {dimension_numbers = #tpu.dot_dimension_numbers<[1], [0], [0], [1], [0, 0, 1, 1], [], []>} : vector<64x12xbf16>, vector<12x128xbf16>, vector<64x128xf32> -> vector<64x128xf32>
    %20 = arith.addf %11, %19 : vector<64x128xf32>
    %21 = vector.extract_strided_slice %16 {offsets = [0, 4], sizes = [64, 4], strides = [1, 1]} : vector<64x12xbf16> to vector<64x4xbf16>
    %c1_i32 = arith.constant 1 : i32
    %22 = arith.addi %1, %c1_i32 : i32
    %c0_13 = arith.constant 0 : index
    %23 = arith.index_cast %22 : i32 to index
    %c0_14 = arith.constant 0 : index
    %c0_15 = arith.constant 0 : index
    %24 = vector.load %arg3[%c0_13, %23, %c0_14, %c0_15] : memref<2x9x8x12xbf16, #tpu.memory_space<vmem>>, vector<1x8x8x12xbf16>
    %25 = vector.shape_cast %24 : vector<1x8x8x12xbf16> to vector<8x8x12xbf16>
    %26 = vector.shape_cast %25 : vector<8x8x12xbf16> to vector<64x12xbf16>
    %c2 = arith.constant 2 : index
    %c0_16 = arith.constant 0 : index
    %c0_17 = arith.constant 0 : index
    %27 = vector.load %arg4[%c2, %c0_16, %c0_17] : memref<3x12x128xbf16, #tpu.memory_space<vmem>>, vector<1x12x128xbf16>
    %28 = vector.shape_cast %27 : vector<1x12x128xbf16> to vector<12x128xbf16>
    %cst_18 = arith.constant dense<0.000000e+00> : vector<64x128xf32>
    %29 = tpu.matmul %26, %28, %cst_18 {dimension_numbers = #tpu.dot_dimension_numbers<[1], [0], [0], [1], [0, 0, 1, 1], [], []>} : vector<64x12xbf16>, vector<12x128xbf16>, vector<64x128xf32> -> vector<64x128xf32>
    %30 = arith.addf %20, %29 : vector<64x128xf32>
    %31 = vector.shape_cast %30 : vector<64x128xf32> to vector<1x8x8x128xf32>
    %32 = arith.truncf %31 : vector<1x8x8x128xf32> to vector<1x8x8x128xbf16>
    %c0_19 = arith.constant 0 : index
    %c0_20 = arith.constant 0 : index
    %c0_21 = arith.constant 0 : index
    %c0_22 = arith.constant 0 : index
    %33 = vector.load %arg6[%c0_19, %c0_20, %c0_21, %c0_22] : memref<1x8x8x128xbf16, #tpu.memory_space<vmem>>, vector<1x8x8x128xbf16>
    tpu.vector_store %arg6[%c0_19, %c0_20, %c0_21, %c0_22], %32 {strides = array<i32>} : memref<1x8x8x128xbf16, #tpu.memory_space<vmem>>, vector<1x8x8x128xbf16>,
    %cst_23 = arith.constant dense<0.000000e+00> : vector<128xf32>
    %34 = vector.multi_reduction <add>, %30, %cst_23 [0] : vector<64x128xf32> to vector<128xf32>
    %35 = vector.shape_cast %34 : vector<128xf32> to vector<1x128xf32>
    %36 = arith.mulf %30, %30 : vector<64x128xf32>
    %cst_24 = arith.constant dense<0.000000e+00> : vector<128xf32>
    %37 = vector.multi_reduction <add>, %36, %cst_24 [0] : vector<64x128xf32> to vector<128xf32>
    %38 = vector.shape_cast %37 : vector<128xf32> to vector<1x128xf32>
    %39 = tpu.concatenate %35, %38 in 0 : vector<1x128xf32>, vector<1x128xf32> -> vector<2x128xf32>
    %c0_25 = arith.constant 0 : index
    %c0_26 = arith.constant 0 : index
    %c0_27 = arith.constant 0 : index
    %c0_28 = arith.constant 0 : index
    %40 = vector.load %arg7[%c0_25, %c0_26, %c0_27, %c0_28] : memref<1x1x2x128xf32, #tpu.memory_space<vmem>>, vector<1x1x2x128xf32>
    %41 = vector.shape_cast %40 : vector<1x1x2x128xf32> to vector<2x128xf32>
    %42 = vector.shape_cast %39 : vector<2x128xf32> to vector<1x1x2x128xf32>
    tpu.vector_store %arg7[%c0_25, %c0_26, %c0_27, %c0_28], %42 {strides = array<i32>} : memref<1x1x2x128xf32, #tpu.memory_space<vmem>>, vector<1x1x2x128xf32>,
    %c0_29 = arith.constant 0 : index
    %c0_30 = arith.constant 0 : index
    %43 = vector.load %arg5[%c0_29, %c0_30] : memref<4x128xbf16, #tpu.memory_space<vmem>>, vector<4x128xbf16>
    %cst_31 = arith.constant dense<0.000000e+00> : vector<64x128xf32>
    %44 = tpu.matmul %21, %43, %cst_31 {dimension_numbers = #tpu.dot_dimension_numbers<[1], [0], [0], [1], [0, 0, 1, 1], [], []>} : vector<64x4xbf16>, vector<4x128xbf16>, vector<64x128xf32> -> vector<64x128xf32>
    %45 = vector.shape_cast %44 : vector<64x128xf32> to vector<1x8x8x128xf32>
    %46 = arith.truncf %45 : vector<1x8x8x128xf32> to vector<1x8x8x128xbf16>
    %c0_32 = arith.constant 0 : index
    %c0_33 = arith.constant 0 : index
    %c0_34 = arith.constant 0 : index
    %c0_35 = arith.constant 0 : index
    %47 = vector.load %arg8[%c0_32, %c0_33, %c0_34, %c0_35] : memref<1x8x8x128xbf16, #tpu.memory_space<vmem>>, vector<1x8x8x128xbf16>
    tpu.vector_store %arg8[%c0_32, %c0_33, %c0_34, %c0_35], %46 {strides = array<i32>} : memref<1x8x8x128xbf16, #tpu.memory_space<vmem>>, vector<1x8x8x128xbf16>,
    %cst_36 = arith.constant dense<0.000000e+00> : vector<128xf32>
    %48 = vector.multi_reduction <add>, %44, %cst_36 [0] : vector<64x128xf32> to vector<128xf32>
    %49 = vector.shape_cast %48 : vector<128xf32> to vector<1x128xf32>
    %50 = arith.mulf %44, %44 : vector<64x128xf32>
    %cst_37 = arith.constant dense<0.000000e+00> : vector<128xf32>
    %51 = vector.multi_reduction <add>, %50, %cst_37 [0] : vector<64x128xf32> to vector<128xf32>
    %52 = vector.shape_cast %51 : vector<128xf32> to vector<1x128xf32>
    %53 = tpu.concatenate %49, %52 in 0 : vector<1x128xf32>, vector<1x128xf32> -> vector<2x128xf32>
    %c0_38 = arith.constant 0 : index
    %c0_39 = arith.constant 0 : index
    %c0_40 = arith.constant 0 : index
    %c0_41 = arith.constant 0 : index
    %54 = vector.load %arg9[%c0_38, %c0_39, %c0_40, %c0_41] : memref<1x1x2x128xf32, #tpu.memory_space<vmem>>, vector<1x1x2x128xf32>
    %55 = vector.shape_cast %54 : vector<1x1x2x128xf32> to vector<2x128xf32>
    %56 = vector.shape_cast %53 : vector<2x128xf32> to vector<1x1x2x128xf32>
    tpu.vector_store %arg9[%c0_38, %c0_39, %c0_40, %c0_41], %56 {strides = array<i32>} : memref<1x1x2x128xf32, #tpu.memory_space<vmem>>, vector<1x1x2x128xf32>,
    return
  }
  func.func @transform_0(%arg0: i32, %arg1: i32, %arg2: i32) -> (i32, i32, i32, i32) {
    %c0_i32 = arith.constant 0 : i32
    %c0_i32_0 = arith.constant 0 : i32
    %c0_i32_1 = arith.constant 0 : i32
    %c0_i32_2 = arith.constant 0 : i32
    return %arg0, %c0_i32, %c0_i32_0, %c0_i32_1 : i32, i32, i32, i32
  }
  func.func @transform_1(%arg0: i32, %arg1: i32, %arg2: i32) -> (i32, i32, i32) {
    %c0_i32 = arith.constant 0 : i32
    %c0_i32_0 = arith.constant 0 : i32
    %c0_i32_1 = arith.constant 0 : i32
    return %c0_i32, %c0_i32_0, %arg1 : i32, i32, i32
  }
  func.func @transform_2(%arg0: i32, %arg1: i32, %arg2: i32) -> (i32, i32) {
    %c0_i32 = arith.constant 0 : i32
    %c0_i32_0 = arith.constant 0 : i32
    return %c0_i32, %arg1 : i32, i32
  }
  func.func @transform_3(%arg0: i32, %arg1: i32, %arg2: i32) -> (i32, i32, i32, i32) {
    %c0_i32 = arith.constant 0 : i32
    %c0_i32_0 = arith.constant 0 : i32
    return %arg0, %arg2, %c0_i32, %arg1 : i32, i32, i32, i32
  }
  func.func @transform_4(%arg0: i32, %arg1: i32, %arg2: i32) -> (i32, i32, i32, i32) {
    %c0_i32 = arith.constant 0 : i32
    %c0_i32_0 = arith.constant 0 : i32
    return %arg0, %arg2, %c0_i32, %arg1 : i32, i32, i32, i32
  }
  func.func @transform_5(%arg0: i32, %arg1: i32, %arg2: i32) -> (i32, i32, i32, i32) {
    %c0_i32 = arith.constant 0 : i32
    %c0_i32_0 = arith.constant 0 : i32
    return %arg0, %arg2, %c0_i32, %arg1 : i32, i32, i32, i32
  }
  func.func @transform_6(%arg0: i32, %arg1: i32, %arg2: i32) -> (i32, i32, i32, i32) {
    %c0_i32 = arith.constant 0 : i32
    %c0_i32_0 = arith.constant 0 : i32
    return %arg0, %arg2, %c0_i32, %arg1 : i32, i32, i32, i32
  }
}

</mosaic_0001>

<bundles_post_ra>
// kernel: tpu_custom_call.1
= control target key start
LH: loop header
LB: loop body
LE: loop exit
PB: predicated region body
PF: predicated region fallthrough
CT: control target
= control target key end

     0   :  { %s2140_s0 = inlined_call_operand.hbm [shape: bf16[4,9,8,12], index: 0, kind: input, shape index: {}]   ;;  %s2141_s1 = inlined_call_operand.hbm [shape: bf16[3,12,128], index: 1, kind: input, shape index: {}]   ;;  %s2142_s2 = inlined_call_operand.vmem [shape: bf16[4,128], index: 2, kind: input, shape index: {}]   ;;  %s2143_s3 = inlined_call_operand.hbm [shape: bf16[2,8,8,128], index: 3, kind: output, shape index: {0}]   ;;  %s2144_s4 = inlined_call_operand.hbm [shape: f32[2,1,2,128], index: 4, kind: output, shape index: {1}]   ;;  %s2145_s5 = inlined_call_operand.hbm [shape: bf16[2,8,8,128], index: 5, kind: output, shape index: {2}]   ;;  %s2146_s6 = inlined_call_operand.hbm [shape: f32[2,1,2,128], index: 6, kind: output, shape index: {3}]  }
   0x1   :  { %2154 = sst [smem:[#allocation18_spill]] %s2141_s1 }
   0x2   :  { %12 = vsyncpa [#allocation3], 0 }
   0x3   :  { %14 = vsyncpa [#allocation3 + $0x1], 0 }
   0x4   :  { %15 = vsyncpa [#allocation6], 0 }
   0x5   :  { %16 = vsyncpa [#allocation4], 0 }
   0x6   :  { %18 = vsyncpa [#allocation4 + $0x1], 0 }
   0x7   :  { %19 = vsyncpa [#allocation9], 0 }
   0x8   :  { %21 = vsyncpa [#allocation9 + $0x1], 0 }
   0x9   :  { %22 = vsyncpa [#allocation12], 0 }
   0xa   :  { %24 = vsyncpa [#allocation12 + $0x1], 0  ;;  %s1815_s21 = smov 0   ;;  %s1817_s22 = smov 0  }
   0xb   :  { %s1819_s23 = smov 0   ;;  %s1821_s24 = smov 0  }
   0xc   :  { %s1823_s25 = smov 0   ;;  %s1825_s26 = smov 0  }
   0xd LB: > { %s1846_s27 = sadd.s32 4294967295, %s1767_s26   ;;  %s2147_s28 = sadd.s32 4294967294, %s1767_s26   ;;  %s1767_s26 = sphi %s1825_s26, %s30_s26   ;;  %s1763_s25 = sphi %s1823_s25, %s2175_s25   ;;  %s1759_s24 = sphi %s1821_s24, %s2174_s24   ;;  %s1755_s23 = sphi %s1819_s23, %s2173_s23   ;;  %s1751_s22 = sphi %s1817_s22, %s2172_s22   ;;  %s1747_s21 = sphi %s1815_s21, %s2171_s21  }
   0xe   : > { %p69_p0 = scmp.ne.s32.totalorder %s1751_s22, %s1747_s21  ;;  %p70_p1 = scmp.eq.s32.totalorder %s1846_s27, 0 }
   0xf   : > { %p155_p3 = scmp.eq.s32.totalorder %s2147_s28, 1  ;;  %p1248_p5 = scmp.ge.s32.totalorder %s1767_s26, 1 }
  0x10   : > { %p1857_p4 = por %p70_p1, %p69_p0  ;;  %p252_p7 = scmp.lt.s32.totalorder %s1767_s26, 3 }
  0x11   : > { %p1862_p6 = por %p155_p3, %p69_p0  ;;  %s1769_s8 = smov [#allocation5]  }
  0x12   : > { %p1867_p8 = pnand %p1248_p5, %p252_p7  ;;  %s266_s9 = sshll.u32 %s1769_s8, 4  ;;  %s267_s9 = int_to_ptr.vmem [resolvable:$true] %s266_s9 }
  0x13   : > { %s2156_s30 = scalar_select %p1862_p6, 1, 0 }
  0x14   : > { %p1449_p9 = pneg %p1867_p8  ;;  %p1251_p10 = scmp.ge.s32.totalorder %s1767_s26, 2 }
  0x15   : > { %s49_s11 = sadd.s32 1, %s1763_s25  ;;  %s1554_s12 = scalar_lea.vmem %s267_s9, 384 }
  0x16   : > { %p1876_p11 = pnand %p1449_p9, %p70_p1  ;;  %p1555_p13 = scmp.ne.s32.totalorder %s267_s9, %s1554_s12 }
  0x17   : > { %p1562_p5 = scmp.lt.s32.totalorder %s267_s9, %s267_s9  ;;  %p1563_p7 = scmp.lt.s32.totalorder %s1554_s12, %s1554_s12 }
  0x18   : > { %p1545_p12 = pneg %p1876_p11 }
  0x19   : > { %p1564_p2 = por %p1563_p7, %p1562_p5 }
  0x1a   : > { %p1557_p0 = pnand %p1555_p13, %p1545_p12 }
  0x1c   : > { %p1558_p3 = pneg %p1557_p0 }
  0x1e   : > { %p1565_p6 = pnand %p1564_p2, %p1558_p3 }
  0x20   : > { %1568 = shalt.err (!%p1565_p6)
}
  0x21   : > { %s2148_s13 = smov 64   ;;  %s2149_s14 = smov 4  }
  0x22   : > { %s2159_s1 = sld [smem:[#allocation18_spill]]  ;;  %p51_p2 = scmp.ge.s32.totalorder %s49_s11, 2 }
  0x23   : > { %s56_s17 = sadd.s32 1, %s1755_s23  ;;  %p63_p6 = scmp.ne.s32.totalorder %s1755_s23, %s1751_s22 }
  0x24   : > { %p64_p9 = scmp.eq.s32.totalorder %s1767_s26, 0  ;;  %s2177_s11 = smov (%p51_p2, %s49_s11), 0 }
  0x25   : > { %p2160_p13 = scmp.eq.s32.totalorder %s1846_s27, 1  ;;  %s53_s19 = ssub.s32 %s1763_s25, %s2177_s11 }
  0x26   : > { %p65_p12 = por %p64_p9, %p63_p6  ;;  %p1471_p3 = scmp.lt.s32.totalorder %s1767_s26, 2 }
  0x27   : > { %p1899_p0 = por %p2160_p13, %p63_p6  ;;  %p54_p5 = scmp.eq.s32.totalorder %s53_s19, 0 }
  0x28   : > { %1452 = dma.hbm_to_vmem [thread:$0]  (!%p1876_p11), %s2159_s1, 384, %s267_s9, [#allocation6], %s2148_s13, %s2148_s13, %s2149_s14  }
  0x29   : > { %s287_s20 = sand.u32 1, %s1755_s23   ;;  %s1433_s9 = smul.u32 1152, %s1763_s25 }
  0x2a   : > { %s1432_s8 = smul.u32 72, %s287_s20  ;;  %p1911_p11 = pnand %p1471_p3, %p65_p12 }
  0x2b   : > { %s1908_s10 = scalar_select %p54_p5, %s1755_s23, %s56_s17  }
  0x2c   : > { %s291_s12 = scalar_lea.vmem [#allocation2], %s1432_s8  ;;  %s298_s14 = scalar_lea.hbm %s2140_s0, %s1433_s9 }
  0x2d   : > { %s299_s15 = sshll.u32 %s291_s12, 4  ;;  %s288_s1 = scalar_lea.sflag [#allocation3], %s287_s20  ;;  %s300_s15 = int_to_ptr.vmem [resolvable:$true] %s299_s15 }
  0x2e   : > { %p1571_p7 = pneg %p1911_p11  ;;  %s1582_s19 = scalar_lea.vmem %s300_s15, 1152 }
  0x2f   : > { %p1583_p2 = scmp.ne.s32.totalorder %s300_s15, %s1582_s19  ;;  %s1772_s17 = smov [#allocation2]  }
  0x30   : > { %s1587_s8 = sshll.u32 %s1772_s17, 4  ;;  %s1588_s8 = int_to_ptr.vmem [resolvable:$false] %s1587_s8 }
  0x31   : > { %p1585_p6 = pnand %p1583_p2, %p1571_p7  ;;  %s1589_s12 = scalar_lea.vmem %s1588_s8, 2304 }
  0x32   : > { %p1590_p12 = scmp.lt.s32.totalorder %s300_s15, %s1588_s8  ;;  %p1591_p13 = scmp.lt.s32.totalorder %s1589_s12, %s1582_s19 }
  0x33   : > { %p1586_p9 = pneg %p1585_p6 }
  0x34   : > { %p1592_p3 = por %p1591_p13, %p1590_p12 }
  0x36   : > { %p1593_p5 = pnand %p1592_p3, %p1586_p9 }
  0x38   : > { %1596 = shalt.err (!%p1593_p5)
}
  0x39   : > { %s2163_s28 = smov 4   ;;  %s2164_s13 = smov 64  }
  0x3a   : > { %1456 = dma.hbm_to_vmem [thread:$0]  (!%p1911_p11), %s298_s14, 1152, %s300_s15, %s288_s1, %s2164_s13, %s2164_s13, %s2163_s28  }
  0x3b   : > { %311 = sbr.rel (%p1867_p8) target bundleno = 438 (0x1b6), region = 32  ;;  %s1928_s20 = sand.u32 (!%p1867_p8), 1, %s1751_s22  }
  0x3c   : > { %s1434_s9 = smul.u32 (!%p1867_p8), 72, %s1928_s20  ;;  %s314_s19 = scalar_lea.sflag (!%p1867_p8), [#allocation3], %s1928_s20 }
  0x3e   : > { %s1932_s17 = scalar_lea.vmem (!%p1867_p8), [#allocation2], %s1434_s9 }
  0x40   : > { %1726 = dma.done.wait (%p1857_p4), %s314_s19, 1152  }
  0x41   : > { %1728 = vsyncadd (%p1857_p4), %s314_s19, 4294966144 }
  0x42   : > { %1730 = dma.done.wait (%p70_p1), [#allocation6], 384  }
  0x43   : > { %1732 = vsyncadd (%p70_p1), [#allocation6], 4294966912  ;;  %vm429_vm0 = vcmask 97280   ;;  %v1528_v0 = vld [vmem:[%s1932_s17 + $0x24] sm:$0xff]   ;;  %v1529_v1 = vld [vmem:[%s1932_s17 + $0x2c] sm:$0xff]   ;;  %s1773_s1 = smov 124  }
  0x44   : > { %797 = vrot.lane.b32.xlu0 %v1528_v0, %s1773_s1  ;;  %v1530_v2 = vld [vmem:[%s1932_s17 + $0x34] sm:$0xff]   ;;  %1390 = vmatprep.mubr.msk.bf16.mxu0 %vm429_vm0, %v1528_v0  ;;  %v1531_v3 = vld [vmem:[%s1932_s17 + $0x3c] sm:$0xff]   ;;  %vm442_vm1 = vcmask 1045504   ;;  %v1536_v10 = vld [vmem:[%s1932_s17 + $0x8] sm:$0xff]   ;;  %vm818_vm2 = vcmask 1041408   ;;  %vm805_vm3 = vcmask 31744  }
  0x45   : > { %801 = vrot.lane.b32.xlu1 %v1530_v2, %s1773_s1  ;;  %v1532_v4 = vld [vmem:[#allocation5 + $0x8] sm:$0x3f]   ;;  %v1533_v5 = vld [vmem:[#allocation5] sm:$0x3f]   ;;  %v1535_v7 = vld [vmem:[%s1932_s17] sm:$0xff]   ;;  %s1257_s14 = sshll.u32 %s1928_s20, 5 }
  0x46   : > { %1428 = vmatprep.subr.msk.bf16.mxu0 %vm442_vm1, %v1532_v4  ;;  %v444_v6 = vsel %vm442_vm1, %v1532_v4, 0  ;;  %1429 = vmatprep.subr.msk.bf16.mxu1 %vm442_vm1, %v1533_v5  ;;  %v549_v8 = vsel %vm442_vm1, %v1533_v5, 0  ;;  %v1534_v9 = vld [vmem:[#allocation5 + $0x10] sm:$0x3f]   ;;  %v1539_v12 = vld [vmem:[%s1932_s17 + $0x10] sm:$0xff]   ;;  %s1978_s15 = scalar_lea.vmem [#allocation7], %s1257_s14 }
  0x47   : > { %1389 = vmatpush3.bf16.msra.mxu0 %v444_v6  ;;  %1399 = vmatpush3.bf16.msra.mxu1 %v549_v8  ;;  %v668_v11 = vsel %vm442_vm1, %v1534_v9, 0  ;;  %v1537_v13 = vld [vmem:[%s1932_s17 + $0x4] sm:$0xff]   ;;  %v796_v14 = vld [vmem:[%s2142_s2] sm:$0x3]  ;;  %v1538_v17 = vld [vmem:[%s1932_s17 + $0xc] sm:$0xff]   ;;  %s971_s16 = sshll.u32 %s1978_s15, 4  ;;  %s1984_s16 = int_to_ptr.vmem [resolvable:$true] %s971_s16 }
  0x48   : > { %799 = vrot.lane.b32.xlu0 %v1529_v1, %s1773_s1  ;;  %1430 = vmatprep.subr.msk.bf16.mxu0 %vm442_vm1, %v1534_v9  ;;  %v1540_v15 = vld [vmem:[%s1932_s17 + $0x18] sm:$0xff]   ;;  %v820_v16 = vsel %vm818_vm2, %v796_v14, 0  ;;  %s2150_s8 = sshll.u32 %s1759_s24, 9  ;;  %s940_s9 = scalar_lea.sflag [#allocation4], %s1928_s20 }
  0x49   : > { %803 = vrot.lane.b32.xlu1 %v1531_v3, %s1773_s1  ;;  %1400 = vmatprep.mubr.msk.bf16.mxu1 %vm429_vm0, %v1535_v7  ;;  %v1541_v18 = vld [vmem:[%s1932_s17 + $0x14] sm:$0xff]   ;;  %v1542_v19 = vld [vmem:[%s1932_s17 + $0x1c] sm:$0xff]   ;;  %s1992_s13 = scalar_lea.hbm %s2143_s3, %s2150_s8  ;;  %s1597_s19 = scalar_lea.vmem %s1984_s16, 512 }
  0x4a   : > { %1391 = vmatmul.mubr.msk.bf16.vlgmr.msra.gmra.mxu0 %vm429_vm0, %v1529_v1  ;;  %1401 = vmatmul.mubr.msk.bf16.vlgmr.msra.gmra.mxu1 %vm429_vm0, %v1536_v10  ;;  %p1598_p1 = scmp.ne.s32.totalorder %s1984_s16, %s1597_s19  ;;  %s1774_s17 = smov [#allocation7]  }
  0x4b   : > { %1394 = vmatprep.mubr.msk.bf16.mxu0 %vm429_vm0, %v1530_v2  ;;  %1409 = vmatpush3.bf16.msra.mxu0 %v668_v11  ;;  %s1601_s1 = sshll.u32 %s1774_s17, 4  ;;  %s1602_s1 = int_to_ptr.vmem [resolvable:$false] %s1601_s1 }
  0x4c   : > { %1404 = vmatprep.mubr.msk.bf16.mxu1 %vm429_vm0, %v1539_v12  ;;  %1431 = vmatprep.subr.msk.bf16.mxu1 %vm818_vm2, %v796_v14  ;;  %p1599_p4 = pnand %p1598_p1, %p1899_p0  ;;  %s1603_s29 = scalar_lea.vmem %s1602_s1, 1024 }
  0x4d   : > { %1419 = vmatpush3.bf16.msra.mxu1 %v820_v16  ;;  %p1604_p11 = scmp.lt.s32.totalorder %s1984_s16, %s1602_s1  ;;  %p1605_p7 = scmp.lt.s32.totalorder %s1603_s29, %s1597_s19 }
  0x4e   : > { %p1600_p8 = pneg %p1599_p4 }
  0x4f   : > { %p1606_p2 = por %p1605_p7, %p1604_p11 }
  0x51   : > { %p1607_p6 = pnand %p1606_p2, %p1600_p8 }
  0x52   : > { %1395 = vmatmul.mubr.msk.bf16.gmra.mxu0 %vm429_vm0, %v1531_v3  ;;  %1405 = vmatmul.mubr.msk.bf16.gmra.mxu1 %vm429_vm0, %v1540_v15 }
  0x53   : > { %1410 = vmatprep.mubr.msk.bf16.mxu0 %vm429_vm0, %v1537_v13 }
  0x5a   : > { %1411 = vmatmul.mubr.msk.bf16.vlgmr.msra.gmra.mxu0 %vm429_vm0, %v1538_v17 }
  0x5b   : > { %1414 = vmatprep.mubr.msk.bf16.mxu0 %vm429_vm0, %v1541_v18 }
  0x62   : > { %1415 = vmatmul.mubr.msk.bf16.gmra.mxu0 %vm429_vm0, %v1542_v19 }
  0xb6   : > { %v798_v20 = vpop.permute.xlu0 %797 }
  0xb7   : > { %1420 = vmatprep.mubr.msk.bf16.mxu1 %vm805_vm3, %v798_v20  ;;  %v802_v21 = vpop.permute.xlu1 %801 }
  0xba   : > { %v800_v22 = vpop.permute.xlu0 %799 }
  0xbb   : > { %1421 = vmatmul.mubr.msk.bf16.vlgmr.msra.gmra.mxu1 %vm805_vm3, %v800_v22  ;;  %v804_v23 = vpop.permute.xlu1 %803 }
  0xbc   : > { %1424 = vmatprep.mubr.msk.bf16.mxu1 %vm805_vm3, %v802_v21 }
  0xc3   : > { %1425 = vmatmul.mubr.msk.bf16.gmra.mxu1 %vm805_vm3, %v804_v23 }
 0x10a   : > { %v1392_v24 = vpop.f32.mrf.mxu0  ;;  %v1402_v26 = vpop.f32.mrf.mxu1 }
 0x10b   : > { %v594_v39 = vadd.f32 %v1402_v26, %v1392_v24 }
 0x10c   : > { %v480_v25 = vpop.f32.mrf.mxu0  ;;  %v585_v28 = vpop.f32.mrf.mxu1 }
 0x10d   : > { %v586_v37 = vadd.f32 %v585_v28, %v480_v25 }
 0x10e   : > { %v1393_v27 = vpop.f32.mrf.mxu0  ;;  %v1403_v30 = vpop.f32.mrf.mxu1 }
 0x10f   : > { %v597_v40 = vadd.f32 %v1403_v30, %v1393_v27 }
 0x110   : > { %v483_v29 = vpop.f32.mrf.mxu0  ;;  %v588_v32 = vpop.f32.mrf.mxu1 }
 0x111   : > { %v589_v44 = vadd.f32 %v588_v32, %v483_v29 }
 0x112   : > { %v1396_v31 = vpop.f32.mrf.mxu0  ;;  %v1406_v35 = vpop.f32.mrf.mxu1 }
 0x113   : > { %v610_v54 = vadd.f32 %v1406_v35, %v1396_v31 }
 0x114   : > { %v496_v33 = vpop.f32.mrf.mxu0  ;;  %v601_v41 = vpop.f32.mrf.mxu1 }
 0x115   : > { %v602_v53 = vadd.f32 %v601_v41, %v496_v33 }
 0x116   : > { %v1397_v34 = vpop.f32.mrf.mxu0  ;;  %v1407_v48 = vpop.f32.mrf.mxu1 }
 0x117   : > { %v613_v56 = vadd.f32 %v1407_v48, %v1397_v34 }
 0x118   : > { %v499_v36 = vpop.f32.mrf.mxu0  ;;  %v604_v61 = vpop.f32.mrf.mxu1 }
 0x119   : > { %v605_v4 = vadd.f32 %v604_v61, %v499_v36 }
 0x11a   : > { %v1412_v38 = vpop.f32.mrf.mxu0 }
 0x11b   : > { %v737_v46 = vadd.f32 %v1412_v38, %v594_v39 }
 0x11c   : > { %v704_v42 = vpop.f32.mrf.mxu0 }
 0x11d   : > { %v735_v43 = vadd.f32 %v704_v42, %v586_v37  ;;  %v774_v57 = vmul.f32 %v737_v46, %v737_v46 }
 0x11e   : > { %v1413_v45 = vpop.f32.mrf.mxu0 }
 0x11f   : > { %v738_v47 = vadd.f32 %v1413_v45, %v597_v40  ;;  %v772_v50 = vmul.f32 %v735_v43, %v735_v43 }
 0x120   : > { %v707_v49 = vpop.f32.mrf.mxu0 }
 0x121   : > { %v1330_v51 = vpack.c.bf16 %v738_v47, %v737_v46  ;;  %v736_v52 = vadd.f32 %v707_v49, %v589_v44  ;;  %v775_v63 = vmul.f32 %v738_v47, %v738_v47 }
 0x122   : > { %v1416_v55 = vpop.f32.mrf.mxu0 }
 0x123   : > { %1362 = vst [vmem:[%s1978_s15 + $0x8] sm:$0xff] %v1330_v51   ;;  %v1325_v58 = vpack.c.bf16 %v736_v52, %v735_v43  ;;  %v759_v59 = vadd.f32 %v736_v52, %v735_v43  ;;  %v773_v60 = vmul.f32 %v736_v52, %v736_v52  ;;  %v741_v3 = vadd.f32 %v1416_v55, %v610_v54 }
 0x124   : > { %v720_v62 = vpop.f32.mrf.mxu0 }
 0x125   : > { %1326 = vst [vmem:[%s1978_s15] sm:$0xff] %v1325_v58   ;;  %v760_v0 = vadd.f32 %v759_v59, %v737_v46  ;;  %v780_v1 = vadd.f32 %v773_v60, %v772_v50  ;;  %v739_v2 = vadd.f32 %v720_v62, %v602_v53  ;;  %v778_v16 = vmul.f32 %v741_v3, %v741_v3 }
 0x126   : > { %v1417_v5 = vpop.f32.mrf.mxu0 }
 0x127   : > { %v781_v6 = vadd.f32 %v780_v1, %v774_v57  ;;  %v761_v7 = vadd.f32 %v760_v0, %v738_v47  ;;  %v776_v8 = vmul.f32 %v739_v2, %v739_v2  ;;  %v742_v9 = vadd.f32 %v1417_v5, %v613_v56 }
 0x128   : > { %v723_v10 = vpop.f32.mrf.mxu0 }
 0x129   : > { %v762_v11 = vadd.f32 %v761_v7, %v739_v2  ;;  %v782_v12 = vadd.f32 %v781_v6, %v775_v63  ;;  %v1340_v13 = vpack.c.bf16 %v742_v9, %v741_v3  ;;  %v740_v14 = vadd.f32 %v723_v10, %v605_v4 }
 0x12a   : > { %v779_v20 = vmul.f32 %v742_v9, %v742_v9 }
 0x12b   : > { %v783_v15 = vadd.f32 %v782_v12, %v776_v8  ;;  %1364 = vst [vmem:[%s1978_s15 + $0x18] sm:$0xff] %v1340_v13   ;;  %v1335_v17 = vpack.c.bf16 %v740_v14, %v739_v2  ;;  %v763_v18 = vadd.f32 %v762_v11, %v740_v14  ;;  %v777_v19 = vmul.f32 %v740_v14, %v740_v14 }
 0x12d   : > { %1363 = vst [vmem:[%s1978_s15 + $0x10] sm:$0xff] %v1335_v17   ;;  %v764_v21 = vadd.f32 %v763_v18, %v741_v3  ;;  %v784_v22 = vadd.f32 %v783_v15, %v777_v19 }
 0x12e   : > { %1610 = shalt.err (!%p1607_p6)
}
 0x12f   : > { %s1611_s7 = scalar_lea.hbm %s1992_s13, 512  ;;  %s1615_s28 = scalar_lea.hbm %s2143_s3, 1024 }
 0x130   : > { %p1612_p9 = scmp.ne.s32.totalorder %s1992_s13, %s1611_s7  ;;  %p1616_p3 = scmp.lt.s32.totalorder %s1992_s13, %s2143_s3 }
 0x131   : > { %p1617_p5 = scmp.lt.s32.totalorder %s1615_s28, %s1611_s7 }
 0x132   : > { %p1613_p12 = pnand %p1612_p9, %p1899_p0 }
 0x133   : > { %p1618_p1 = por %p1617_p5, %p1616_p3 }
 0x134   : > { %p1614_p13 = pneg %p1613_p12 }
 0x136   : > { %p1619_p4 = pnand %p1618_p1, %p1614_p13 }
 0x138   : > { %1622 = shalt.err (!%p1619_p4)
}
 0x139   : > { %s2152_s19 = smov 64   ;;  %s1776_s1 = smov 4   ;;  %v765_v23 = vadd.f32 %v764_v21, %v742_v9  ;;  %v785_v24 = vadd.f32 %v784_v22, %v778_v16  ;;  %vm793_vm4 = vcmask 1040384  }
 0x13a   : > { %1441 = dma.vmem_to_hbm [thread:$0]  (%p1899_p0), %s1984_s16, 512, %s1992_s13, %s940_s9, %s2152_s19, %s2152_s19, %s1776_s1  }
 0x13b   : > { %v766_v25 = vrot.slane %v765_v23, 4  ;;  %v786_v26 = vadd.f32 %v785_v24, %v779_v20  ;;  %s2151_s8 = sshll.u32 %s1928_s20, 1  ;;  %s944_s29 = sand.u32 1, %s1846_s27  }
 0x13c   : > { %s2153_s16 = sshll.u32 %s1759_s24, 5  ;;  %s354_s13 = scalar_lea.vmem [#allocation8], %s2151_s8 }
 0x13d   : > { %v767_v27 = vadd.f32 %v766_v25, %v765_v23  ;;  %v787_v28 = vrot.slane %v786_v26, 4  ;;  %s989_s9 = sshll.u32 %s354_s13, 4  ;;  %s2031_s12 = scalar_lea.hbm %s2144_s4, %s2153_s16  ;;  %s990_s9 = int_to_ptr.vmem [resolvable:$true] %s989_s9 }
 0x13e   : > { %s2034_s28 = scalar_lea.sflag [#allocation9], %s944_s29  ;;  %s1623_s27 = scalar_lea.vmem %s990_s9, 32 }
 0x13f   : > { %v768_v29 = vrot.slane %v767_v27, 2  ;;  %v788_v30 = vadd.f32 %v787_v28, %v786_v26  ;;  %p1624_p8 = scmp.ne.s32.totalorder %s990_s9, %s1623_s27  ;;  %s1777_s17 = smov [#allocation8]  }
 0x140   : > { %s1627_s8 = sshll.u32 %s1777_s17, 4  ;;  %s1628_s8 = int_to_ptr.vmem [resolvable:$false] %s1627_s8 }
 0x141   : > { %v769_v31 = vadd.f32 %v768_v29, %v767_v27  ;;  %v789_v32 = vrot.slane %v788_v30, 2  ;;  %p1625_p11 = pnand %p1624_p8, %p1899_p0  ;;  %s1629_s19 = scalar_lea.vmem %s1628_s8, 64 }
 0x142   : > { %p1630_p2 = scmp.lt.s32.totalorder %s990_s9, %s1628_s8  ;;  %p1631_p6 = scmp.lt.s32.totalorder %s1629_s19, %s1623_s27 }
 0x143   : > { %v770_v33 = vrot.slane %v769_v31, 1  ;;  %v790_v34 = vadd.f32 %v789_v32, %v788_v30  ;;  %p1626_p7 = pneg %p1625_p11 }
 0x144   : > { %p1632_p9 = por %p1631_p6, %p1630_p2 }
 0x145   : > { %v771_v35 = vadd.f32 %v770_v33, %v769_v31  ;;  %v791_v36 = vrot.slane %v790_v34, 1 }
 0x146   : > { %p1633_p12 = pnand %p1632_p9, %p1626_p7 }
 0x147   : > { %v792_v37 = vadd.f32 %v791_v36, %v790_v34 }
 0x149   : > { %v794_v38 = vsel %vm793_vm4, %v771_v35, %v792_v37 }
 0x14a   : > { %795 = vst [vmem:[%s354_s13] sm:$0x3] %v794_v38 }
 0x14b   : > { %1636 = shalt.err (!%p1633_p12)
}
 0x14c   : > { %s1637_s29 = scalar_lea.hbm %s2031_s12, 32  ;;  %s1641_s15 = scalar_lea.hbm %s2144_s4, 64 }
 0x14d   : > { %p1638_p13 = scmp.ne.s32.totalorder %s2031_s12, %s1637_s29  ;;  %p1642_p1 = scmp.lt.s32.totalorder %s2031_s12, %s2144_s4 }
 0x14e   : > { %p1643_p4 = scmp.lt.s32.totalorder %s1641_s15, %s1637_s29 }
 0x14f   : > { %p1639_p3 = pnand %p1638_p13, %p1899_p0 }
 0x150   : > { %p1644_p8 = por %p1643_p4, %p1642_p1 }
 0x151   : > { %p1640_p5 = pneg %p1639_p3 }
 0x153   : > { %p1645_p11 = pnand %p1644_p8, %p1640_p5 }
 0x155   : > { %1648 = shalt.err (!%p1645_p11)
}
 0x156   : > { %1442 = dma.vmem_to_hbm [thread:$0]  (%p1899_p0), %s990_s9, 32, %s2031_s12, %s2034_s28  }
 0x157   : > { %s361_s19 = scalar_lea.vmem [#allocation10], %s1257_s14  ;;  %s2165_s14 = sshll.u32 %s1759_s24, 9 }
 0x158   : > { %s1005_s8 = sshll.u32 %s361_s19, 4  ;;  %s2062_s12 = scalar_lea.hbm %s2145_s5, %s2165_s14  ;;  %s2055_s8 = int_to_ptr.vmem [resolvable:$true] %s1005_s8 }
 0x159   : > { %s1649_s27 = scalar_lea.vmem %s2055_s8, 512  ;;  %s1778_s29 = smov [#allocation10]  }
 0x15a   : > { %p1650_p7 = scmp.ne.s32.totalorder %s2055_s8, %s1649_s27  ;;  %s1653_s13 = sshll.u32 %s1778_s29, 4  ;;  %s1654_s13 = int_to_ptr.vmem [resolvable:$false] %s1653_s13 }
 0x15b   : > { %s1655_s7 = scalar_lea.vmem %s1654_s13, 1024  ;;  %p1656_p9 = scmp.lt.s32.totalorder %s2055_s8, %s1654_s13 }
 0x15c   : > { %p1651_p2 = pnand %p1650_p7, %p1899_p0  ;;  %p1657_p12 = scmp.lt.s32.totalorder %s1655_s7, %s1649_s27 }
 0x15e   : > { %p1652_p6 = pneg %p1651_p2  ;;  %p1658_p13 = por %p1657_p12, %p1656_p9 }
 0x160   : > { %p1659_p3 = pnand %p1658_p13, %p1652_p6 }
 0x17b   : > { %v1422_v39 = vpop.f32.mrf.mxu1 }
 0x17c   : > { %v918_v49 = vmul.f32 %v1422_v39, %v1422_v39 }
 0x17d   : > { %v856_v40 = vpop.f32.mrf.mxu1 }
 0x17e   : > { %v916_v44 = vmul.f32 %v856_v40, %v856_v40 }
 0x17f   : > { %v1423_v41 = vpop.f32.mrf.mxu1 }
 0x180   : > { %v1350_v42 = vpack.c.bf16 %v1423_v41, %v1422_v39  ;;  %v919_v53 = vmul.f32 %v1423_v41, %v1423_v41 }
 0x181   : > { %v859_v43 = vpop.f32.mrf.mxu1 }
 0x182   : > { %1365 = vst [vmem:[%s361_s19 + $0x8] sm:$0xff] %v1350_v42   ;;  %v1345_v45 = vpack.c.bf16 %v859_v43, %v856_v40  ;;  %v903_v46 = vadd.f32 %v859_v43, %v856_v40  ;;  %v917_v47 = vmul.f32 %v859_v43, %v859_v43 }
 0x183   : > { %v1426_v48 = vpop.f32.mrf.mxu1 }
 0x184   : > { %1346 = vst [vmem:[%s361_s19] sm:$0xff] %v1345_v45   ;;  %v904_v50 = vadd.f32 %v1422_v39, %v903_v46  ;;  %v924_v51 = vadd.f32 %v917_v47, %v916_v44  ;;  %v922_v2 = vmul.f32 %v1426_v48, %v1426_v48 }
 0x185   : > { %v872_v52 = vpop.f32.mrf.mxu1 }
 0x186   : > { %v925_v54 = vadd.f32 %v924_v51, %v918_v49  ;;  %v905_v55 = vadd.f32 %v1423_v41, %v904_v50  ;;  %v920_v58 = vmul.f32 %v872_v52, %v872_v52 }
 0x187   : > { %v1427_v56 = vpop.f32.mrf.mxu1 }
 0x188   : > { %v906_v57 = vadd.f32 %v905_v55, %v872_v52  ;;  %v926_v59 = vadd.f32 %v925_v54, %v919_v53  ;;  %v1360_v60 = vpack.c.bf16 %v1427_v56, %v1426_v48 }
 0x189   : > { %v875_v61 = vpop.f32.mrf.mxu1 }
 0x18a   : > { %v927_v62 = vadd.f32 %v926_v59, %v920_v58  ;;  %1367 = vst [vmem:[%s361_s19 + $0x18] sm:$0xff] %v1360_v60   ;;  %v1355_v63 = vpack.c.bf16 %v875_v61, %v872_v52  ;;  %v907_v0 = vadd.f32 %v906_v57, %v875_v61  ;;  %v921_v1 = vmul.f32 %v875_v61, %v875_v61 }
 0x18c   : > { %1366 = vst [vmem:[%s361_s19 + $0x10] sm:$0xff] %v1355_v63   ;;  %v908_v3 = vadd.f32 %v1426_v48, %v907_v0  ;;  %v928_v4 = vadd.f32 %v927_v62, %v921_v1 }
 0x18d   : > { %1662 = shalt.err (!%p1659_p3)
}
 0x18e   : > { %s1663_s15 = scalar_lea.hbm %s2062_s12, 512  ;;  %s1667_s14 = scalar_lea.hbm %s2145_s5, 1024 }
 0x18f   : > { %p1664_p5 = scmp.ne.s32.totalorder %s2062_s12, %s1663_s15  ;;  %p1668_p8 = scmp.lt.s32.totalorder %s2062_s12, %s2145_s5 }
 0x190   : > { %p1669_p11 = scmp.lt.s32.totalorder %s1667_s14, %s1663_s15 }
 0x191   : > { %p1665_p1 = pnand %p1664_p5, %p1899_p0 }
 0x192   : > { %p1670_p7 = por %p1669_p11, %p1668_p8 }
 0x193   : > { %p1666_p4 = pneg %p1665_p1 }
 0x195   : > { %p1671_p2 = pnand %p1670_p7, %p1666_p4 }
 0x197   : > { %1674 = shalt.err (!%p1671_p2)
}
 0x198   : > { %s2166_s27 = smov 64   ;;  %v923_v5 = vmul.f32 %v1427_v56, %v1427_v56  ;;  %v909_v6 = vadd.f32 %v1427_v56, %v908_v3  ;;  %v929_v7 = vadd.f32 %v928_v4, %v922_v2  ;;  %s2167_s29 = sshll.u32 %s1928_s20, 1 }
 0x199   : > { %1443 = dma.vmem_to_hbm [thread:$0]  (%p1899_p0), %s2055_s8, 512, %s2062_s12, %s2034_s28, %s2166_s27, %s2166_s27, %s1776_s1  }
 0x19a   : > { %v910_v8 = vrot.slane %v909_v6, 4  ;;  %v930_v9 = vadd.f32 %v929_v7, %v923_v5  ;;  %s368_s13 = scalar_lea.vmem [#allocation11], %s2167_s29  ;;  %s2168_s28 = sshll.u32 %s1759_s24, 5 }
 0x19b   : > { %s1023_s1 = sshll.u32 %s368_s13, 4  ;;  %s2095_s7 = scalar_lea.hbm %s2146_s6, %s2168_s28  ;;  %s1024_s1 = int_to_ptr.vmem [resolvable:$true] %s1023_s1 }
 0x19c   : > { %v911_v10 = vadd.f32 %v910_v8, %v909_v6  ;;  %v931_v11 = vrot.slane %v930_v9, 4  ;;  %s955_s15 = scalar_lea.sflag [#allocation12], %s1928_s20  ;;  %s1675_s17 = scalar_lea.vmem %s1024_s1, 32 }
 0x19d   : > { %p1676_p6 = scmp.ne.s32.totalorder %s1024_s1, %s1675_s17  ;;  %s1779_s19 = smov [#allocation11]  }
 0x19e   : > { %v912_v12 = vrot.slane %v911_v10, 2  ;;  %v932_v13 = vadd.f32 %v931_v11, %v930_v9  ;;  %s1679_s14 = sshll.u32 %s1779_s19, 4  ;;  %s1680_s14 = int_to_ptr.vmem [resolvable:$false] %s1679_s14 }
 0x19f   : > { %p1677_p9 = pnand %p1676_p6, %p1899_p0  ;;  %s1681_s16 = scalar_lea.vmem %s1680_s14, 64 }
 0x1a0   : > { %v913_v14 = vadd.f32 %v912_v12, %v911_v10  ;;  %v933_v15 = vrot.slane %v932_v13, 2  ;;  %p1682_p13 = scmp.lt.s32.totalorder %s1024_s1, %s1680_s14  ;;  %p1683_p3 = scmp.lt.s32.totalorder %s1681_s16, %s1675_s17 }
 0x1a1   : > { %p1678_p12 = pneg %p1677_p9 }
 0x1a2   : > { %v914_v16 = vrot.slane %v913_v14, 1  ;;  %v934_v17 = vadd.f32 %v933_v15, %v932_v13  ;;  %p1684_p5 = por %p1683_p3, %p1682_p13 }
 0x1a4   : > { %v935_v18 = vrot.slane %v934_v17, 1  ;;  %v915_v19 = vadd.f32 %v914_v16, %v913_v14  ;;  %p1685_p1 = pnand %p1684_p5, %p1678_p12 }
 0x1a6   : > { %v936_v20 = vadd.f32 %v935_v18, %v934_v17 }
 0x1a8   : > { %v937_v21 = vsel %vm793_vm4, %v915_v19, %v936_v20 }
 0x1a9   : > { %938 = vst [vmem:[%s368_s13] sm:$0x3] %v937_v21 }
 0x1aa   : > { %1688 = shalt.err (!%p1685_p1)
}
 0x1ab   : > { %s1689_s24 = scalar_lea.hbm %s2095_s7, 32  ;;  %s1693_s27 = scalar_lea.hbm %s2146_s6, 64 }
 0x1ac   : > { %p1690_p4 = scmp.ne.s32.totalorder %s2095_s7, %s1689_s24  ;;  %p1694_p7 = scmp.lt.s32.totalorder %s2095_s7, %s2146_s6 }
 0x1ad   : > { %p1695_p2 = scmp.lt.s32.totalorder %s1693_s27, %s1689_s24 }
 0x1ae   : > { %p1691_p8 = pnand %p1690_p4, %p1899_p0 }
 0x1af   : > { %p1696_p6 = por %p1695_p2, %p1694_p7 }
 0x1b0   : > { %p1692_p11 = pneg %p1691_p8 }
 0x1b2   : > { %p1697_p9 = pnand %p1696_p6, %p1692_p11 }
 0x1b4   : > { %1700 = shalt.err (!%p1697_p9)
}
 0x1b5   : > { %1444 = dma.vmem_to_hbm [thread:$0]  (%p1899_p0), %s1024_s1, 32, %s2095_s7, %s955_s15  }
 0x1b6 PF: > { %s1035_s28 = sand.u32 1, %s1747_s21   ;;  %p2169_p12 = scmp.ne.s32.totalorder %s2156_s30, 0 }
 0x1b7   : > { %s1036_s8 = scalar_lea.sflag [#allocation4], %s1035_s28 }
 0x1b8   : > { %p1458_p13 = pnand %p1251_p10, %p2169_p12 }
 0x1ba   : > { %p1459_p3 = pneg %p1458_p13 }
 0x1bc   : > { %1734 = dma.done.wait (%p1459_p3), %s1036_s8, 512  }
 0x1bd   : > { %1736 = vsyncadd (%p1459_p3), %s1036_s8, 4294966784  ;;  %s2170_s12 = sadd.s32 4294967294, %s1767_s26  }
 0x1be   : > { %s1044_s17 = sand.u32 1, %s2170_s12  }
 0x1bf   : > { %s1045_s19 = scalar_lea.sflag [#allocation9], %s1044_s17 }
 0x1c0   : > { %1738 = dma.done.wait (%p1459_p3), %s1045_s19, 544  }
 0x1c1   : > { %1740 = vsyncadd (%p1459_p3), %s1045_s19, 4294966752  ;;  %s1063_s18 = scalar_lea.sflag [#allocation12], %s1035_s28 }
 0x1c2   : > { %1742 = dma.done.wait (%p1459_p3), %s1063_s18, 32  }
 0x1c3   : > { %1744 = vsyncadd (%p1459_p3), %s1063_s18, 4294967264  ;;  %s30_s26 = sadd.s32 1, %s1767_s26   ;;  %s2171_s21 = smov %s1751_s22 }
 0x1c4   : > { %p27_p0 = scmp.ge.s32.totalorder %s30_s26, 4   ;;  %s2172_s22 = smov %s1755_s23 }
 0x1c5   : > { %s2173_s23 = smov %s1908_s10  ;;  %s2174_s24 = smov %s1763_s25 }
 0x1c6   : > { %s2175_s25 = smov %s2177_s11  ;;  %29 = sbr.rel (!%p27_p0) target bundleno = 13 (0xd), region = 139 }
 0x1cb   :  { %1068 = vsyncpa [#allocation3], 1 }
 0x1cc   :  { %1070 = vsyncpa [#allocation3 + $0x1], 1 }
 0x1cd   :  { %1071 = vsyncpa [#allocation6], 1 }
 0x1ce   :  { %1072 = vsyncpa [#allocation4], 1 }
 0x1cf   :  { %1074 = vsyncpa [#allocation4 + $0x1], 1 }
 0x1d0   :  { %1075 = vsyncpa [#allocation9], 1 }
 0x1d1   :  { %1077 = vsyncpa [#allocation9 + $0x1], 1 }
 0x1d2   :  { %1078 = vsyncpa [#allocation12], 1 }
 0x1d3   :  { %1080 = vsyncpa [#allocation12 + $0x1], 1 }

</bundles_post_ra>
